<compile_context>
chip_gen: v7x
topology: tpu7x:2x2x1
jax: 0.10.0
libtpu: 0.0.40
codegen_flags: <defaults>
</compile_context>

<pallas_src>
import jax
import jax.numpy as jnp
from jax.experimental import pallas as pl
from jax.experimental.pallas import tpu as pltpu


def _round_up(x, m):
    return ((x + m - 1) // m) * m


def _leaky_relu(x, slope=0.2):          # nn.LeakyReLU(0.2) in the spec
    return jnp.where(x >= 0, x, slope * x)


def _layernorm(x, gamma, beta, eps=1e-5):
    mu = jnp.mean(x, axis=-1, keepdims=True)
    var = jnp.mean((x - mu) ** 2, axis=-1, keepdims=True)
    return (x - mu) * jax.lax.rsqrt(var + eps) * gamma + beta


# ----------------- Kernel 1: conv-as-matmul + bias + LeakyReLU ---------------
# p_ref: (TM, 32) bf16 patches, w_ref: (32, 64) bf16, b_ref: (1, 64) f32
# out_ref: (TM, 64) bf16 — 64-wide so the downstream reshape is zero-copy.
def conv_kernel(p_ref, w_ref, b_ref, out_ref):
    acc = jnp.dot(p_ref[...], w_ref[...], preferred_element_type=jnp.float32)
    out_ref[...] = _leaky_relu(acc + b_ref[...]).astype(out_ref.dtype)


# ----------------- Kernel 2: FC stack, K-tiled FC1 reduction -----------------
# grid axis k streams w1 in (TK, 512) bf16 blocks; FC1 accumulates into
# acc_ref (f32); LN -> LeakyReLU -> FC2 -> LN -> LeakyReLU -> FC3 run on the
# last step only.  w2 is bf16 (f32 MXU accumulation), w3 stays f32 (tiny).
def fc_kernel(x_ref, w1_ref, b1_ref, g1_ref, be1_ref,
              w2_ref, b2_ref, g2_ref, be2_ref,
              w3_ref, b3_ref, out_ref, acc_ref):
    k = pl.program_id(0)

    @pl.when(k == 0)
    def _():
        acc_ref[...] = jnp.zeros_like(acc_ref)

    acc_ref[...] += jnp.dot(x_ref[...], w1_ref[...],
                            preferred_element_type=jnp.float32)

    @pl.when(k == pl.num_programs(0) - 1)
    def _():
        h = acc_ref[...] + b1_ref[...]
        h = _leaky_relu(_layernorm(h, g1_ref[...], be1_ref[...]))
        h = (jnp.dot(h.astype(jnp.bfloat16), w2_ref[...],
                     preferred_element_type=jnp.float32) + b2_ref[...])
        h = _leaky_relu(_layernorm(h, g2_ref[...], be2_ref[...]))
        out_ref[...] = (jnp.dot(h, w3_ref[...],
                                preferred_element_type=jnp.float32)
                        + b3_ref[...])


# ----------------- one-time parameter preparation ----------------------------
def prepare_params(params, Ho, Wo, label_dims, tk=8192):
    Cc, Kp = 64, 32

    # conv weight (64,1,5,5) -> (25,64), pad K 25->32, bf16; output stays 64.
    wc = params["conv_w"].reshape(Cc, 25).T
    wc = jnp.pad(wc, ((0, Kp - 25), (0, 0))).astype(jnp.bfloat16)
    bc = params["conv_b"].reshape(1, Cc).astype(jnp.float32)

    # FC1 weight: permute rows from NCHW flatten order to NHWC flatten order
    # (so the per-forward transpose of the conv feature map is not needed),
    # zero-pad the contraction dim to a multiple of TK, cast to bf16.
    K_conv = Cc * Ho * Wo
    K1 = K_conv + label_dims
    w1 = params["w1"]
    w1_conv = (w1[:K_conv].reshape(Cc, Ho, Wo, 512)
               .transpose(1, 2, 0, 3).reshape(K_conv, 512))
    w1_nhwc = jnp.concatenate([w1_conv, w1[K_conv:]], axis=0)
    K1p = _round_up(K1, tk)
    w1p = jnp.pad(w1_nhwc, ((0, K1p - K1), (0, 0))).astype(jnp.bfloat16)

    # lane-dense last layer: (512, 1) -> (512, 128), kept f32 (tiny).
    w3 = jnp.pad(params["w3"], ((0, 0), (0, 127))).astype(jnp.float32)
    b3 = jnp.pad(params["b3"].reshape(1, 1), ((0, 0), (0, 127))).astype(jnp.float32)

    return dict(
        wc=wc, bc=bc,
        w1=w1p, b1=params["b1"].reshape(1, 512).astype(jnp.float32),
        g1=params["g1"].reshape(1, 512).astype(jnp.float32),
        beta1=params["beta1"].reshape(1, 512).astype(jnp.float32),
        w2=params["w2"].astype(jnp.bfloat16),
        b2=params["b2"].reshape(1, 512).astype(jnp.float32),
        g2=params["g2"].reshape(1, 512).astype(jnp.float32),
        beta2=params["beta2"].reshape(1, 512).astype(jnp.float32),
        w3=w3, b3=b3,
        K1=K1, K1p=K1p, tk=tk,
    )


# ----------------- forward ----------------------------------------------------
def discriminator_forward(prep, img_nchw, labels, noise_nchw, *, tm=2048):
    B, C, H, W = img_nchw.shape
    assert C == 1
    Ho, Wo = H // 2, W // 2
    Cc, Kp = 64, 32

    # noise injection fused into the (plain-JAX) im2col prep — no extra kernel.
    # im2col stack runs in bf16 to halve the expanded-patch HBM traffic.
    # TODO(synk): move im2col fully into the conv kernel (VMEM-resident image
    #             tile, 25 shifted slices built on-chip) to remove the 25x
    #             expansion entirely.
    noisy = (img_nchw.reshape(B, H, W)
             + 0.1 * noise_nchw.reshape(B, H, W)).astype(jnp.bfloat16)

    # im2col (layout glue): pad=2 "same" conv, stride 2
    x_pad = jnp.pad(noisy, ((0, 0), (2, 2), (2, 2)))
    patches = []
    for kh in range(5):
        for kw in range(5):
            patches.append(x_pad[:, kh:kh + 2 * Ho:2, kw:kw + 2 * Wo:2])
    M = B * Ho * Wo
    P = jnp.stack(patches, axis=-1).reshape(M, 25)

    TM = min(tm, _round_up(M, 8))
    M_pad = _round_up(M, TM)
    P = jnp.pad(P, ((0, M_pad - M), (0, Kp - 25))).astype(jnp.bfloat16)

    conv_out = pl.pallas_call(
        conv_kernel,
        grid=(M_pad // TM,),
        in_specs=[pl.BlockSpec((TM, Kp), lambda i: (i, 0)),
                  pl.BlockSpec((Kp, Cc), lambda i: (0, 0)),
                  pl.BlockSpec((1, Cc), lambda i: (0, 0))],
        out_specs=pl.BlockSpec((TM, Cc), lambda i: (i, 0)),
        out_shape=jax.ShapeDtypeStruct((M_pad, Cc), jnp.bfloat16),
        compiler_params=pltpu.CompilerParams(
            dimension_semantics=("parallel",)),
    )(P, prep["wc"], prep["bc"])

    # NHWC flatten (no transpose, no channel slice — conv output is already
    # 64-wide bf16); FC1 weight rows were pre-permuted to match.
    feat = conv_out[:M].reshape(B, Ho * Wo * Cc)
    x_fc = jnp.concatenate([feat, labels.astype(jnp.bfloat16)], axis=-1)

    K1, K1p, TK = prep["K1"], prep["K1p"], prep["tk"]
    B_pad = _round_up(B, 8)
    x_fc = jnp.pad(x_fc, ((0, B_pad - B), (0, K1p - K1))).astype(jnp.bfloat16)

    out = pl.pallas_call(
        fc_kernel,
        grid=(K1p // TK,),
        in_specs=[
            pl.BlockSpec((B_pad, TK), lambda k: (0, k)),     # x (K-tiled)
            pl.BlockSpec((TK, 512), lambda k: (k, 0)),       # w1 (streamed)
            pl.BlockSpec((1, 512), lambda k: (0, 0)),        # b1
            pl.BlockSpec((1, 512), lambda k: (0, 0)),        # g1
            pl.BlockSpec((1, 512), lambda k: (0, 0)),        # beta1
            pl.BlockSpec((512, 512), lambda k: (0, 0)),      # w2 (resident, bf16)
            pl.BlockSpec((1, 512), lambda k: (0, 0)),        # b2
            pl.BlockSpec((1, 512), lambda k: (0, 0)),        # g2
            pl.BlockSpec((1, 512), lambda k: (0, 0)),        # beta2
            pl.BlockSpec((512, 128), lambda k: (0, 0)),      # w3 (resident)
            pl.BlockSpec((1, 128), lambda k: (0, 0)),        # b3
        ],
        out_specs=pl.BlockSpec((B_pad, 128), lambda k: (0, 0)),
        out_shape=jax.ShapeDtypeStruct((B_pad, 128), jnp.float32),
        scratch_shapes=[pltpu.VMEM((B_pad, 512), jnp.float32)],
        compiler_params=pltpu.CompilerParams(
            dimension_semantics=("arbitrary",),
            vmem_limit_bytes=48 << 20),   # ~18 MiB peak at TK=8192; v5e default
                                          # (16 MiB) would overflow otherwise.
    )(x_fc, prep["w1"], prep["b1"], prep["g1"], prep["beta1"],
      prep["w2"], prep["b2"], prep["g2"], prep["beta2"],
      prep["w3"], prep["b3"])

    return out[:B, :1]   # (B, 1), matching nn.Linear(512, 1)


if __name__ == "__main__":
    key = jax.random.PRNGKey(0)
    (k_img, k_lab, k_noise, k_cw, k_cb,
     k_w1, k_b1, k_w2, k_b2, k_w3, k_b3) = jax.random.split(key, 11)

    # small shapes consistent with the module: image halves spatially under the
    # stride-2 conv, FC1 in-dim = 64*(H/2)*(W/2) + label_dims
    B, H, W = 2, 16, 16
    LABEL_DIMS = 32
    Ho, Wo = H // 2, W // 2
    K1 = 64 * Ho * Wo + LABEL_DIMS

    img = jax.random.normal(k_img, (B, 1, H, W), jnp.float32)
    labels = jax.random.normal(k_lab, (B, LABEL_DIMS), jnp.float32)
    noise = jax.random.normal(k_noise, (B, 1, H, W), jnp.float32)  # stands in for torch.randn

    params = dict(
        conv_w=jax.random.normal(k_cw, (64, 1, 5, 5), jnp.float32) * 0.05,
        conv_b=jax.random.normal(k_cb, (64,), jnp.float32) * 0.05,
        w1=jax.random.normal(k_w1, (K1, 512), jnp.float32) * 0.02,
        b1=jax.random.normal(k_b1, (512,), jnp.float32) * 0.02,
        g1=jnp.ones((512,), jnp.float32), beta1=jnp.zeros((512,), jnp.float32),
        w2=jax.random.normal(k_w2, (512, 512), jnp.float32) * 0.02,
        b2=jax.random.normal(k_b2, (512,), jnp.float32) * 0.02,
        g2=jnp.ones((512,), jnp.float32), beta2=jnp.zeros((512,), jnp.float32),
        w3=jax.random.normal(k_w3, (512, 1), jnp.float32) * 0.02,
        b3=jax.random.normal(k_b3, (1,), jnp.float32) * 0.02,
    )

    # one-time parameter prep (row permutation, padding, bf16 cast)
    prep = prepare_params(params, Ho, Wo, LABEL_DIMS, tk=8192)

    out = jax.block_until_ready(discriminator_forward(prep, img, labels, noise))
    assert out.shape == (B, 1) and out.dtype == jnp.float32
    assert bool(jnp.all(jnp.isfinite(out)))
    print("KERNEL_OK")
</pallas_src>

<mosaic_0001>
module attributes {stable_mosaic.version = 11 : i64} {
  func.func @conv_kernel(%arg0: i32, %arg1: memref<128x32xbf16, #tpu.memory_space<vmem>>, %arg2: memref<32x64xbf16, #tpu.memory_space<vmem>>, %arg3: memref<1x64xf32, #tpu.memory_space<vmem>>, %arg4: memref<128x64xbf16, #tpu.memory_space<vmem>>) attributes {dimension_semantics = [#tpu.dimension_semantics<parallel>], iteration_bounds = array<i64: 1>, scalar_prefetch = 0 : i64, scratch_operands = 0 : i64, tpu.core_type = #tpu.core_type<tc>, window_params = [{transform_indices = @transform_0, window_bounds = array<i64: 128, 32>}, {pipeline_mode = #tpu.pipeline_mode<synchronous>, transform_indices = @transform_1, window_bounds = array<i64: 32, 64>}, {pipeline_mode = #tpu.pipeline_mode<synchronous>, transform_indices = @transform_2, window_bounds = array<i64: 1, 64>}, {transform_indices = @transform_3, window_bounds = array<i64: 128, 64>}]} {
    %c0 = arith.constant 0 : index
    %c0_0 = arith.constant 0 : index
    %0 = vector.load %arg1[%c0, %c0_0] : memref<128x32xbf16, #tpu.memory_space<vmem>>, vector<128x32xbf16>
    %c0_1 = arith.constant 0 : index
    %c0_2 = arith.constant 0 : index
    %1 = vector.load %arg2[%c0_1, %c0_2] : memref<32x64xbf16, #tpu.memory_space<vmem>>, vector<32x64xbf16>
    %cst = arith.constant dense<0.000000e+00> : vector<128x64xf32>
    %2 = tpu.matmul %0, %1, %cst {dimension_numbers = #tpu.dot_dimension_numbers<[1], [0], [0], [1], [0, 0, 1, 1], [], []>} : vector<128x32xbf16>, vector<32x64xbf16>, vector<128x64xf32> -> vector<128x64xf32>
    %c0_3 = arith.constant 0 : index
    %c0_4 = arith.constant 0 : index
    %3 = vector.load %arg3[%c0_3, %c0_4] : memref<1x64xf32, #tpu.memory_space<vmem>>, vector<1x64xf32>
    %4 = vector.broadcast %3 : vector<1x64xf32> to vector<128x64xf32>
    %5 = arith.addf %2, %4 : vector<128x64xf32>
    %cst_5 = arith.constant 0.000000e+00 : f32
    %6 = vector.broadcast %cst_5 : f32 to vector<128x64xf32>
    %7 = arith.cmpf oge, %5, %6 : vector<128x64xf32>
    %cst_6 = arith.constant 2.000000e-01 : f32
    %8 = vector.broadcast %cst_6 : f32 to vector<128x64xf32>
    %9 = arith.mulf %8, %5 : vector<128x64xf32>
    %10 = arith.select %7, %5, %9 : vector<128x64xi1>, vector<128x64xf32>
    %11 = arith.truncf %10 : vector<128x64xf32> to vector<128x64xbf16>
    %c0_7 = arith.constant 0 : index
    %c0_8 = arith.constant 0 : index
    %12 = vector.load %arg4[%c0_7, %c0_8] : memref<128x64xbf16, #tpu.memory_space<vmem>>, vector<128x64xbf16>
    tpu.vector_store %arg4[%c0_7, %c0_8], %11 {strides = array<i32>} : memref<128x64xbf16, #tpu.memory_space<vmem>>, vector<128x64xbf16>,
    return
  }
  func.func @transform_0(%arg0: i32) -> (i32, i32) {
    %c0_i32 = arith.constant 0 : i32
    %c0_i32_0 = arith.constant 0 : i32
    return %arg0, %c0_i32 : i32, i32
  }
  func.func @transform_1(%arg0: i32) -> (i32, i32) {
    %c0_i32 = arith.constant 0 : i32
    %c0_i32_0 = arith.constant 0 : i32
    %c0_i32_1 = arith.constant 0 : i32
    return %c0_i32, %c0_i32_0 : i32, i32
  }
  func.func @transform_2(%arg0: i32) -> (i32, i32) {
    %c0_i32 = arith.constant 0 : i32
    %c0_i32_0 = arith.constant 0 : i32
    %c0_i32_1 = arith.constant 0 : i32
    return %c0_i32, %c0_i32_0 : i32, i32
  }
  func.func @transform_3(%arg0: i32) -> (i32, i32) {
    %c0_i32 = arith.constant 0 : i32
    %c0_i32_0 = arith.constant 0 : i32
    return %arg0, %c0_i32 : i32, i32
  }
}

</mosaic_0001>

<bundles_post_ra>
// kernel: tpu_custom_call.1
= control target key start
LH: loop header
LB: loop body
LE: loop exit
PB: predicated region body
PF: predicated region fallthrough
CT: control target
= control target key end

     0   :  { %vm94_vm0 = vcmask 261120   ;;  %vm328_vm1 = vcmask 519168   ;;  %s587_s1 = inlined_call_operand.vmem [shape: bf16[32,64], index: 1, kind: input, shape index: {}]   ;;  %s588_s0 = inlined_call_operand.vmem [shape: bf16[128,32], index: 0, kind: input, shape index: {}]   ;;  %s589_s2 = inlined_call_operand.vmem [shape: f32[1,64], index: 2, kind: input, shape index: {}]   ;;  %s590_s3 = inlined_call_operand.vmem [shape: bf16[128,64], index: 3, kind: output, shape index: {}]  }
   0x1   :  { %v434_v0 = vld [vmem:[%s587_s1] sm:$0xff]   ;;  %v435_v1 = vld [vmem:[%s587_s1 + $0x8] sm:$0xff]   ;;  %v440_v6 = vld [vmem:[%s588_s0 + $0x10] sm:$0xff]  }
   0x2   :  { %410 = vmatprep.subr.bf16.mxu0 %v434_v0  ;;  %430 = vmatprep.subr.bf16.mxu1 %v434_v0  ;;  %v436_v2 = vld [vmem:[%s588_s0] sm:$0xff]   ;;  %v438_v4 = vld [vmem:[%s588_s0 + $0x8] sm:$0xff]   ;;  %v441_v7 = vld [vmem:[%s588_s0 + $0x30] sm:$0xff]  }
   0x3   :  { %411 = vmatpush3.bf16.msra.mxu0 %v434_v0  ;;  %432 = vmatpush3.bf16.msra.mxu1 %v434_v0  ;;  %v437_v3 = vld [vmem:[%s588_s0 + $0x20] sm:$0xff]   ;;  %v439_v5 = vld [vmem:[%s588_s0 + $0x28] sm:$0xff]   ;;  %v442_v8 = vld [vmem:[%s588_s0 + $0x18] sm:$0xff]  }
   0x4   :  { %412 = vmatprep.subr.bf16.mxu0 %v435_v1  ;;  %431 = vmatprep.subr.bf16.mxu1 %v435_v1  ;;  %v443_v9 = vld [vmem:[%s588_s0 + $0x38] sm:$0xff]   ;;  %v505_v10 = vld [vmem:[%s589_s2] ss:$0 sm:$0xff] }
   0x5   :  { %414 = vmatprep.mubr.msk.bf16.mxu0 %vm94_vm0, %v436_v2  ;;  %422 = vmatprep.mubr.msk.bf16.mxu1 %vm94_vm0, %v437_v3 }
   0x7   :  { %413 = vmatpush3.bf16.msra.mxu0 %v435_v1  ;;  %433 = vmatpush3.bf16.msra.mxu1 %v435_v1 }
   0xa   :  { %415 = vmatmul.mubr.msk.bf16.vlgmr.msra.gmra.mrb[0].mxu0 %vm94_vm0, %v438_v4  ;;  %423 = vmatmul.mubr.msk.bf16.vlgmr.msra.gmra.mrb[0].mxu1 %vm94_vm0, %v439_v5 }
   0xb   :  { %418 = vmatprep.mubr.msk.bf16.mxu0 %vm94_vm0, %v440_v6  ;;  %426 = vmatprep.mubr.msk.bf16.mxu1 %vm94_vm0, %v441_v7 }
  0x12   :  { %419 = vmatmul.mubr.msk.bf16.gmra.mrb[4].mxu0 %vm94_vm0, %v442_v8  ;;  %427 = vmatmul.mubr.msk.bf16.gmra.mrb[4].mxu1 %vm94_vm0, %v443_v9 }
  0xdd   :  { %v416_v11 = vpop.f32.mrb[0].mxu0  ;;  %v424_v12 = vpop.f32.mrb[0].mxu1 }
  0xde   :  { %v162_v13 = vadd.f32 %v416_v11, %v505_v10  ;;  %v194_v14 = vadd.f32 %v424_v12, %v505_v10  ;;  %v153_v15 = vpop.f32.mrb[1].mxu0  ;;  %v185_v16 = vpop.f32.mrb[1].mxu1 }
  0xdf   :  { %v154_v17 = vadd.f32 %v505_v10, %v153_v15  ;;  %v186_v18 = vadd.f32 %v505_v10, %v185_v16  ;;  %v417_v19 = vpop.f32.mrb[2].mxu0  ;;  %v425_v20 = vpop.f32.mrb[2].mxu1 }
  0xe0   :  { %vm218_vm2 = vcmp.ge.f32.partialorder %v162_v13, 0.0  ;;  %v234_v21 = vmul.f32 0.2, %v162_v13  ;;  %vm226_vm3 = vcmp.ge.f32.partialorder %v194_v14, 0.0  ;;  %v242_v22 = vmul.f32 0.2, %v194_v14 }
  0xe1   :  { %vm216_vm4 = vcmp.ge.f32.partialorder %v154_v17, 0.0  ;;  %v232_v23 = vmul.f32 0.2, %v154_v17  ;;  %vm224_vm5 = vcmp.ge.f32.partialorder %v186_v18, 0.0  ;;  %v240_v24 = vmul.f32 0.2, %v186_v18 }
  0xe2   :  { %v250_v25 = vsel %vm218_vm2, %v162_v13, %v234_v21  ;;  %v258_v26 = vsel %vm226_vm3, %v194_v14, %v242_v22  ;;  %v165_v27 = vadd.f32 %v417_v19, %v505_v10  ;;  %v197_v28 = vadd.f32 %v425_v20, %v505_v10  ;;  %v156_v29 = vpop.f32.mrb[3].mxu0  ;;  %v188_v30 = vpop.f32.mrb[3].mxu1 }
  0xe3   :  { %v386_v31 = vpack.c.bf16 %v250_v25, %v250_v25  ;;  %v394_v32 = vpack.c.bf16 %v258_v26, %v258_v26  ;;  %v248_v33 = vsel %vm216_vm4, %v154_v17, %v232_v23  ;;  %v256_v34 = vsel %vm224_vm5, %v186_v18, %v240_v24 }
  0xe4   :  { %v384_v35 = vpack.c.bf16 %v248_v33, %v248_v33  ;;  %v392_v36 = vpack.c.bf16 %v256_v34, %v256_v34  ;;  %vm219_vm6 = vcmp.ge.f32.partialorder %v165_v27, 0.0  ;;  %v235_v37 = vmul.f32 0.2, %v165_v27 }
  0xe5   :  { %331 = vst.msk [vmem:[%s590_s3 + $0x8] sm:$0xf] %vm328_vm1, %v386_v31  ;;  %339 = vst.msk [vmem:[%s590_s3 + $0x28] sm:$0xf] %vm328_vm1, %v394_v32  ;;  %vm227_vm7 = vcmp.ge.f32.partialorder %v197_v28, 0.0  ;;  %v157_v39 = vadd.f32 %v505_v10, %v156_v29  ;;  %v189_v40 = vadd.f32 %v505_v10, %v188_v30  ;;  %v420_v41 = vpop.f32.mrb[4].mxu0 }
  0xe6   :  { %v243_v38 = vmul.f32 0.2, %v197_v28  ;;  %v428_v42 = vpop.f32.mrb[4].mxu1  ;;  %329 = vst.msk [vmem:[%s590_s3] sm:$0xf] %vm328_vm1, %v384_v35  ;;  %v251_v43 = vsel %vm219_vm6, %v165_v27, %v235_v37  ;;  %v178_v44 = vadd.f32 %v420_v41, %v505_v10  ;;  %v169_v46 = vpop.f32.mrb[5].mxu0 }
  0xe7   :  { %337 = vst.msk [vmem:[%s590_s3 + $0x20] sm:$0xf] %vm328_vm1, %v392_v36  ;;  %v210_v45 = vadd.f32 %v428_v42, %v505_v10  ;;  %v201_v47 = vpop.f32.mrb[5].mxu1  ;;  %v387_v48 = vpack.c.bf16 %v251_v43, %v251_v43  ;;  %vm217_vm8 = vcmp.ge.f32.partialorder %v157_v39, 0.0  ;;  %v233_v50 = vmul.f32 0.2, %v157_v39 }
  0xe8   :  { %v259_v49 = vsel %vm227_vm7, %v197_v28, %v243_v38  ;;  %v421_v51 = vpop.f32.mrb[6].mxu0  ;;  %v429_v52 = vpop.f32.mrb[6].mxu1  ;;  %vm225_vm9 = vcmp.ge.f32.partialorder %v189_v40, 0.0  ;;  %v241_v54 = vmul.f32 0.2, %v189_v40  ;;  %vm222_vm10 = vcmp.ge.f32.partialorder %v178_v44, 0.0 }
  0xe9   :  { %v395_v53 = vpack.c.bf16 %v259_v49, %v259_v49  ;;  %v172_v55 = vpop.f32.mrb[7].mxu0  ;;  %v204_v56 = vpop.f32.mrb[7].mxu1  ;;  %332 = vst.msk [vmem:[%s590_s3 + $0xc] sm:$0xf] %vm328_vm1, %v387_v48  ;;  %v249_v57 = vsel %vm217_vm8, %v157_v39, %v233_v50  ;;  %v238_v58 = vmul.f32 0.2, %v178_v44  ;;  %v170_v62 = vadd.f32 %v505_v10, %v169_v46 }
  0xea   :  { %vm230_vm11 = vcmp.ge.f32.partialorder %v210_v45, 0.0  ;;  %v246_v59 = vmul.f32 0.2, %v210_v45  ;;  %v385_v60 = vpack.c.bf16 %v249_v57, %v249_v57  ;;  %v257_v61 = vsel %vm225_vm9, %v189_v40, %v241_v54 }
  0xeb   :  { %340 = vst.msk [vmem:[%s590_s3 + $0x2c] sm:$0xf] %vm328_vm1, %v395_v53  ;;  %v202_v63 = vadd.f32 %v505_v10, %v201_v47  ;;  %v393_v0 = vpack.c.bf16 %v257_v61, %v257_v61  ;;  %v254_v1 = vsel %vm222_vm10, %v178_v44, %v238_v58  ;;  %v181_v3 = vadd.f32 %v421_v51, %v505_v10 }
  0xec   :  { %v262_v2 = vsel %vm230_vm11, %v210_v45, %v246_v59  ;;  %330 = vst.msk [vmem:[%s590_s3 + $0x4] sm:$0xf] %vm328_vm1, %v385_v60  ;;  %v390_v4 = vpack.c.bf16 %v254_v1, %v254_v1  ;;  %vm220_vm12 = vcmp.ge.f32.partialorder %v170_v62, 0.0  ;;  %v236_v6 = vmul.f32 0.2, %v170_v62 }
  0xed   :  { %v398_v5 = vpack.c.bf16 %v262_v2, %v262_v2  ;;  %338 = vst.msk [vmem:[%s590_s3 + $0x24] sm:$0xf] %vm328_vm1, %v393_v0  ;;  %vm228_vm13 = vcmp.ge.f32.partialorder %v202_v63, 0.0  ;;  %v244_v7 = vmul.f32 0.2, %v202_v63  ;;  %vm223_vm14 = vcmp.ge.f32.partialorder %v181_v3, 0.0 }
  0xee   :  { %v239_v8 = vmul.f32 0.2, %v181_v3  ;;  %335 = vst.msk [vmem:[%s590_s3 + $0x18] sm:$0xf] %vm328_vm1, %v390_v4  ;;  %v252_v9 = vsel %vm220_vm12, %v170_v62, %v236_v6  ;;  %v213_v11 = vadd.f32 %v429_v52, %v505_v10  ;;  %v173_v12 = vadd.f32 %v505_v10, %v172_v55 }
  0xef   :  { %343 = vst.msk [vmem:[%s590_s3 + $0x38] sm:$0xf] %vm328_vm1, %v398_v5  ;;  %v205_v13 = vadd.f32 %v505_v10, %v204_v56  ;;  %v388_v14 = vpack.c.bf16 %v252_v9, %v252_v9  ;;  %v260_v15 = vsel %vm228_vm13, %v202_v63, %v244_v7 }
  0xf0   :  { %v255_v16 = vsel %vm223_vm14, %v181_v3, %v239_v8  ;;  %v396_v17 = vpack.c.bf16 %v260_v15, %v260_v15  ;;  %vm231_vm15 = vcmp.ge.f32.partialorder %v213_v11, 0.0  ;;  %v247_v19 = vmul.f32 0.2, %v213_v11 }
  0xf1   :  { %v391_v18 = vpack.c.bf16 %v255_v16, %v255_v16  ;;  %333 = vst.msk [vmem:[%s590_s3 + $0x10] sm:$0xf] %vm328_vm1, %v388_v14  ;;  %vm221_vm0 = vcmp.ge.f32.partialorder %v173_v12, 0.0  ;;  %v237_v20 = vmul.f32 0.2, %v173_v12  ;;  %vm229_vm2 = vcmp.ge.f32.partialorder %v205_v13, 0.0 }
  0xf2   :  { %v245_v21 = vmul.f32 0.2, %v205_v13  ;;  %341 = vst.msk [vmem:[%s590_s3 + $0x30] sm:$0xf] %vm328_vm1, %v396_v17  ;;  %v263_v10 = vsel %vm231_vm15, %v213_v11, %v247_v19 }
  0xf3   :  { %336 = vst.msk [vmem:[%s590_s3 + $0x1c] sm:$0xf] %vm328_vm1, %v391_v18  ;;  %v399_v22 = vpack.c.bf16 %v263_v10, %v263_v10  ;;  %v253_v23 = vsel %vm221_vm0, %v173_v12, %v237_v20 }
  0xf4   :  { %v261_v24 = vsel %vm229_vm2, %v205_v13, %v245_v21  ;;  %v389_v25 = vpack.c.bf16 %v253_v23, %v253_v23 }
  0xf5   :  { %v397_v26 = vpack.c.bf16 %v261_v24, %v261_v24  ;;  %344 = vst.msk [vmem:[%s590_s3 + $0x3c] sm:$0xf] %vm328_vm1, %v399_v22 }
  0xf6   :  { %334 = vst.msk [vmem:[%s590_s3 + $0x14] sm:$0xf] %vm328_vm1, %v389_v25 }
  0xf7   :  { %342 = vst.msk [vmem:[%s590_s3 + $0x34] sm:$0xf] %vm328_vm1, %v397_v26 }

</bundles_post_ra>
